<compile_context>
chip_gen: v7x
topology: tpu7x:2x2x1
jax: 0.10.0
libtpu: 0.0.40
codegen_flags: <defaults>
</compile_context>

<pallas_src>
import functools

import jax
import jax.numpy as jnp
from jax import lax
from jax.experimental import pallas as pl
from jax.experimental.pallas import tpu as pltpu

_GROUP = 8  # rows gathered per inner-loop body on the VMEM fast path


def _round_up(x, m):
    return (x + m - 1) // m * m


def _vmem_capacity_bytes():
    """Per-core VMEM capacity (generation-aware); conservative fallback."""
    try:
        return int(pltpu.get_tpu_info().vmem_capacity_bytes)
    except Exception:
        return 64 * 1024 * 1024  # v7x per-TC size — safe lower bound


def _renorm(rows, max_norm):
    """F.embedding renorm: scale rows whose L2 norm exceeds max_norm.

    Predicate uses sum-of-squares vs max_norm**2 (equivalent, no sqrt on the
    compare path); keeps PyTorch's max_norm/(norm+1e-7) scaling exactly.
    """
    rf = rows.astype(jnp.float32)
    ss = jnp.sum(rf * rf, axis=-1, keepdims=True)
    norm = jnp.sqrt(ss)  # EUP
    scale = jnp.where(ss > max_norm * max_norm, max_norm / (norm + 1e-7), 1.0)
    return rf * scale


# ----------------------------------------------------------------------------
# Path A: weight table resident in VMEM, grouped in-VMEM dynamic row gather.
# ----------------------------------------------------------------------------
def _embedding_vmem_gather_kernel(idx_ref, w_ref, out_ref, *, max_norm, tb):
    # idx_ref: SMEM int32[(n_pad,)]  (scalar-prefetched, clamped indices)
    # w_ref:   VMEM    [(V, Dp)]     full table, resident across all grid steps
    # out_ref: VMEM    [(tb, Dp)]    current output tile
    i = pl.program_id(0)
    base0 = i * tb

    def gather_group(g, carry):
        base = pl.multiple_of(g * _GROUP, _GROUP)
        # 8 independent dynamic row loads in flight; one coalesced (8, Dp)
        # lane/sublane-dense store instead of 8 single-sublane masked stores.
        rows = [
            w_ref[pl.ds(idx_ref[base0 + base + r], 1), :]
            for r in range(_GROUP)
        ]
        out_ref[pl.ds(base, _GROUP), :] = jnp.concatenate(rows, axis=0)
        return carry

    lax.fori_loop(0, tb // _GROUP, gather_group, 0)

    if max_norm is not None:
        out_ref[...] = _renorm(out_ref[...], max_norm).astype(out_ref.dtype)


# ----------------------------------------------------------------------------
# Path B: weight in HBM, per-row DMA gather, double-buffered across tiles,
#         single aggregate wait per tile, optional 2-way megacore split.
# ----------------------------------------------------------------------------
def _embedding_hbm_gather_kernel(idx_ref, w_hbm, out_ref, gbuf, sems, *,
                                 max_norm, tb):
    # idx_ref: SMEM int32[(n_pad,)]  (scalar-prefetched, clamped indices)
    # w_hbm:   HBM      [(V, Dp)]    (memory_space=pl.ANY -> manual DMA gather)
    # out_ref: VMEM     [(tb, Dp)]   current output tile
    # gbuf:    VMEM     [(2, tb, Dp)] double-buffered gather scratch
    # sems:    DMA sems [(2,)]       one shared (byte-counting) semaphore/slot
    o = pl.program_id(0)          # megacore split axis ("parallel")
    i = pl.program_id(1)          # tile axis within this core ("arbitrary")
    nt = pl.num_programs(1)
    t = o * nt + i                # flat tile index
    slot = i % 2

    def issue_tile(tile, dst_slot):
        # Scalar index reads happen inside the issue loop, all *before* any
        # wait in this step (keeps SMEM sst->sld forwarding intact).
        def body(r, carry):
            row = idx_ref[tile * tb + r]
            pltpu.make_async_copy(
                w_hbm.at[row], gbuf.at[dst_slot, r], sems.at[dst_slot]
            ).start()
            return carry

        lax.fori_loop(0, tb, body, 0, unroll=8)

    # Prime the pipeline with the first tile of this core's range.
    @pl.when(i == 0)
    def _prime():
        issue_tile(t, slot)

    # Prefetch the next tile's rows into the other slot *before* waiting on the
    # current tile, so two tiles' worth of row fetches stay in flight.
    @pl.when(i + 1 < nt)
    def _prefetch():
        issue_tile(t + 1, 1 - slot)

    # Aggregate wait: the DMA semaphore counts bytes, and the tb equal-size
    # per-row DMAs into this slot sum to exactly one (tb, Dp) descriptor, so a
    # single wait sized to the whole slot drains them all.  (Only valid because
    # every row DMA has identical byte size.)
    pltpu.make_async_copy(gbuf.at[slot], gbuf.at[slot], sems.at[slot]).wait()

    rows = gbuf[slot]
    if max_norm is not None:
        rows = _renorm(rows, max_norm)
    out_ref[...] = rows.astype(out_ref.dtype)


# ----------------------------------------------------------------------------
# Wrapper (SimpleEmbedding.forward / .get equivalent)
# ----------------------------------------------------------------------------
def simple_embedding_forward(indices, weight, max_norm=None, *,
                             tile_rows=None, force_hbm=False):
    """Pallas TPU equivalent of SimpleEmbedding.forward (row gather + renorm)."""
    assert indices.ndim == 1, "flat EntityList tensor expected"
    n = indices.shape[0]
    v, d = weight.shape
    dtype_bytes = weight.dtype.itemsize

    # Lane-dense layout: pad the embedding dim to a multiple of 128 so row
    # copies / output stores are unmasked full-lane vst.  Zero padding leaves
    # the renorm sum-of-squares unchanged; output is sliced back at the end.
    d_pad = _round_up(d, 128)
    w = weight if d_pad == d else jnp.pad(weight, ((0, 0), (0, d_pad - d)))

    cap = _vmem_capacity_bytes()
    table_bytes = v * d_pad * dtype_bytes

    def _pick_tb(budget_bytes, bufs, cap_rows):
        rows = max(8, budget_bytes // (bufs * d_pad * dtype_bytes))
        tb = min(cap_rows, (rows // 8) * 8)
        return max(8, min(tb, _round_up(n, 8)))

    if tile_rows is not None:
        tb_vmem = tb_hbm = max(8, min((int(tile_rows) // 8) * 8,
                                      _round_up(n, 8)))
    else:
        # Fast path only double-buffers the output tile (2*tb*Dp).
        tb_vmem = _pick_tb(8 * 1024 * 1024, 2, 512)
        # HBM path: 2x gather scratch + 2x out tile; stays well inside even
        # v5e's 16 MiB scoped-VMEM default.
        tb_hbm = _pick_tb(8 * 1024 * 1024, 4, 256)

    out_tile_bytes = 2 * tb_vmem * d_pad * dtype_bytes
    use_vmem = (not force_hbm) and (
        table_bytes + out_tile_bytes + (4 << 20) <= int(0.7 * cap))

    if use_vmem:
        tb = tb_vmem
        n_pad = _round_up(n, tb)
        # Clamp (OOB protection for the unchecked dynamic VMEM read) and pad.
        idx = jnp.zeros((n_pad,), jnp.int32).at[:n].set(
            jnp.clip(indices.astype(jnp.int32), 0, v - 1))
        vmem_limit = min(int(0.9 * cap),
                         max(32 << 20, table_bytes + out_tile_bytes + (4 << 20)))
        kernel = functools.partial(_embedding_vmem_gather_kernel,
                                   max_norm=max_norm, tb=tb)
        out = pl.pallas_call(
            kernel,
            out_shape=jax.ShapeDtypeStruct((n_pad, d_pad), weight.dtype),
            grid_spec=pltpu.PrefetchScalarGridSpec(
                num_scalar_prefetch=1,                         # indices -> SMEM
                grid=(n_pad // tb,),
                in_specs=[pl.BlockSpec((v, d_pad), lambda i, idx: (0, 0))],
                out_specs=pl.BlockSpec((tb, d_pad), lambda i, idx: (i, 0)),
            ),
            compiler_params=pltpu.CompilerParams(
                dimension_semantics=("parallel",),     # independent tiles
                vmem_limit_bytes=vmem_limit,           # generation-aware
            ),
        )(idx, w)
    else:
        tb = tb_hbm
        nt_total = -(-n // tb)
        nsplit = 2 if nt_total >= 2 else 1             # v7x: one half per TC
        n_pad = _round_up(n, tb * nsplit)
        nt_inner = n_pad // (tb * nsplit)
        # Clamp indices; padded-tail rows fetch row 0 (always a valid DMA).
        idx = jnp.zeros((n_pad,), jnp.int32).at[:n].set(
            jnp.clip(indices.astype(jnp.int32), 0, v - 1))
        kernel = functools.partial(_embedding_hbm_gather_kernel,
                                   max_norm=max_norm, tb=tb)
        out = pl.pallas_call(
            kernel,
            out_shape=jax.ShapeDtypeStruct((n_pad, d_pad), weight.dtype),
            grid_spec=pltpu.PrefetchScalarGridSpec(
                num_scalar_prefetch=1,                         # indices -> SMEM
                grid=(nsplit, nt_inner),
                in_specs=[pl.BlockSpec(memory_space=pl.ANY)],  # weight in HBM
                out_specs=pl.BlockSpec(
                    (tb, d_pad),
                    lambda o, i, idx, nt=nt_inner: (o * nt + i, 0)),
                scratch_shapes=[
                    pltpu.VMEM((2, tb, d_pad), weight.dtype),
                    pltpu.SemaphoreType.DMA((2,)),
                ],
            ),
            compiler_params=pltpu.CompilerParams(
                # outer axis splits tiles across TCs (v7x); inner axis carries
                # the cross-step double-buffer state -> must stay sequential.
                dimension_semantics=("parallel", "arbitrary"),
            ),
        )(idx, w)
    return out[:n, :d]


if __name__ == "__main__":
    key = jax.random.PRNGKey(0)
    k_w, k_i, k_w2, k_i2, k_i3 = jax.random.split(key, 5)

    def ref_embedding(idx, w, max_norm=None):
        rows = w[idx]
        if max_norm is None:
            return rows
        norm = jnp.sqrt(jnp.sum(rows * rows, axis=-1, keepdims=True))
        scale = jnp.where(norm > max_norm, max_norm / (norm + 1e-7), 1.0)
        return rows * scale

    V, D, N = 64, 128, 16      # small synthetic embedding table / index batch
    MAX_NORM = 1.0

    weight = jax.random.normal(k_w, (V, D), dtype=jnp.float32)
    indices = jax.random.randint(k_i, (N,), 0, V, dtype=jnp.int32)

    # Fast path: table resident in VMEM, grouped in-VMEM gather (+ renorm).
    out = jax.block_until_ready(
        simple_embedding_forward(indices, weight, max_norm=MAX_NORM))
    assert out.shape == (N, D)
    assert jnp.allclose(out, ref_embedding(indices, weight, MAX_NORM),
                        atol=1e-5, rtol=1e-5)

    # Fast path, max_norm=None (pure gather).
    out_plain = jax.block_until_ready(simple_embedding_forward(indices, weight))
    assert jnp.allclose(out_plain, weight[indices], atol=1e-6)

    # Fallback path: HBM-resident table, double-buffered per-row DMA gather
    # with aggregate waits, 2-way parallel grid split + padded tail.
    N2 = 40
    idx2 = jax.random.randint(k_i2, (N2,), 0, V, dtype=jnp.int32)
    out_hbm = jax.block_until_ready(
        simple_embedding_forward(idx2, weight, max_norm=MAX_NORM,
                                 force_hbm=True, tile_rows=16))
    assert out_hbm.shape == (N2, D)
    assert jnp.allclose(out_hbm, ref_embedding(idx2, weight, MAX_NORM),
                        atol=1e-5, rtol=1e-5)

    out_hbm_plain = jax.block_until_ready(
        simple_embedding_forward(idx2, weight, force_hbm=True, tile_rows=16))
    assert jnp.allclose(out_hbm_plain, weight[idx2], atol=1e-6)

    # Non-128-multiple embedding dim exercises the lane-padding path.
    V3, D3, N3 = 32, 96, 24
    weight3 = jax.random.normal(k_w2, (V3, D3), dtype=jnp.float32)
    idx3 = jax.random.randint(k_i3, (N3,), 0, V3, dtype=jnp.int32)
    out3 = jax.block_until_ready(
        simple_embedding_forward(idx3, weight3, max_norm=MAX_NORM))
    assert out3.shape == (N3, D3)
    assert jnp.allclose(out3, ref_embedding(idx3, weight3, MAX_NORM),
                        atol=1e-5, rtol=1e-5)

    print("KERNEL_OK")
</pallas_src>

<mosaic_0001>
module attributes {stable_mosaic.version = 11 : i64} {
  func.func @_embedding_vmem_gather_kernel(%arg0: i32, %arg1: memref<16xi32, #tpu.memory_space<smem>>, %arg2: memref<64x128xf32, #tpu.memory_space<vmem>>, %arg3: memref<16x128xf32, #tpu.memory_space<vmem>>) attributes {dimension_semantics = [#tpu.dimension_semantics<parallel>], iteration_bounds = array<i64: 1>, scalar_prefetch = 1 : i64, scratch_operands = 0 : i64, tpu.core_type = #tpu.core_type<tc>, window_params = [{pipeline_mode = #tpu.pipeline_mode<synchronous>, transform_indices = @transform_0, window_bounds = array<i64: 64, 128>}, {transform_indices = @transform_1, window_bounds = array<i64: 16, 128>}]} {
    %c16_i32 = arith.constant 16 : i32
    %0 = arith.muli %arg0, %c16_i32 : i32
    %c0_i32 = arith.constant 0 : i32
    %c2_i32 = arith.constant 2 : i32
    %1 = arith.addi %c0_i32, %c2_i32 : i32
    %c1_i32 = arith.constant 1 : i32
    scf.for %arg4 = %c0_i32 to %1 step %c1_i32  : i32 {
      %c8_i32 = arith.constant 8 : i32
      %18 = arith.muli %arg4, %c8_i32 : i32
      %19 = tpu.assume_multiple %18, 8 : i32
      %20 = arith.addi %0, %19 : i32
      %c0_i32_8 = arith.constant 0 : i32
      %21 = arith.addi %20, %c0_i32_8 : i32
      %22 = arith.index_cast %21 : i32 to index
      %23 = memref.load %arg1[%22] : memref<16xi32, #tpu.memory_space<smem>>
      %24 = arith.index_cast %23 : i32 to index
      %c0_9 = arith.constant 0 : index
      %25 = vector.load %arg2[%24, %c0_9] : memref<64x128xf32, #tpu.memory_space<vmem>>, vector<1x128xf32>
      %26 = arith.addi %0, %19 : i32
      %c1_i32_10 = arith.constant 1 : i32
      %27 = arith.addi %26, %c1_i32_10 : i32
      %28 = arith.index_cast %27 : i32 to index
      %29 = memref.load %arg1[%28] : memref<16xi32, #tpu.memory_space<smem>>
      %30 = arith.index_cast %29 : i32 to index
      %c0_11 = arith.constant 0 : index
      %31 = vector.load %arg2[%30, %c0_11] : memref<64x128xf32, #tpu.memory_space<vmem>>, vector<1x128xf32>
      %32 = arith.addi %0, %19 : i32
      %c2_i32_12 = arith.constant 2 : i32
      %33 = arith.addi %32, %c2_i32_12 : i32
      %34 = arith.index_cast %33 : i32 to index
      %35 = memref.load %arg1[%34] : memref<16xi32, #tpu.memory_space<smem>>
      %36 = arith.index_cast %35 : i32 to index
      %c0_13 = arith.constant 0 : index
      %37 = vector.load %arg2[%36, %c0_13] : memref<64x128xf32, #tpu.memory_space<vmem>>, vector<1x128xf32>
      %38 = arith.addi %0, %19 : i32
      %c3_i32 = arith.constant 3 : i32
      %39 = arith.addi %38, %c3_i32 : i32
      %40 = arith.index_cast %39 : i32 to index
      %41 = memref.load %arg1[%40] : memref<16xi32, #tpu.memory_space<smem>>
      %42 = arith.index_cast %41 : i32 to index
      %c0_14 = arith.constant 0 : index
      %43 = vector.load %arg2[%42, %c0_14] : memref<64x128xf32, #tpu.memory_space<vmem>>, vector<1x128xf32>
      %44 = arith.addi %0, %19 : i32
      %c4_i32 = arith.constant 4 : i32
      %45 = arith.addi %44, %c4_i32 : i32
      %46 = arith.index_cast %45 : i32 to index
      %47 = memref.load %arg1[%46] : memref<16xi32, #tpu.memory_space<smem>>
      %48 = arith.index_cast %47 : i32 to index
      %c0_15 = arith.constant 0 : index
      %49 = vector.load %arg2[%48, %c0_15] : memref<64x128xf32, #tpu.memory_space<vmem>>, vector<1x128xf32>
      %50 = arith.addi %0, %19 : i32
      %c5_i32 = arith.constant 5 : i32
      %51 = arith.addi %50, %c5_i32 : i32
      %52 = arith.index_cast %51 : i32 to index
      %53 = memref.load %arg1[%52] : memref<16xi32, #tpu.memory_space<smem>>
      %54 = arith.index_cast %53 : i32 to index
      %c0_16 = arith.constant 0 : index
      %55 = vector.load %arg2[%54, %c0_16] : memref<64x128xf32, #tpu.memory_space<vmem>>, vector<1x128xf32>
      %56 = arith.addi %0, %19 : i32
      %c6_i32 = arith.constant 6 : i32
      %57 = arith.addi %56, %c6_i32 : i32
      %58 = arith.index_cast %57 : i32 to index
      %59 = memref.load %arg1[%58] : memref<16xi32, #tpu.memory_space<smem>>
      %60 = arith.index_cast %59 : i32 to index
      %c0_17 = arith.constant 0 : index
      %61 = vector.load %arg2[%60, %c0_17] : memref<64x128xf32, #tpu.memory_space<vmem>>, vector<1x128xf32>
      %62 = arith.addi %0, %19 : i32
      %c7_i32 = arith.constant 7 : i32
      %63 = arith.addi %62, %c7_i32 : i32
      %64 = arith.index_cast %63 : i32 to index
      %65 = memref.load %arg1[%64] : memref<16xi32, #tpu.memory_space<smem>>
      %66 = arith.index_cast %65 : i32 to index
      %c0_18 = arith.constant 0 : index
      %67 = vector.load %arg2[%66, %c0_18] : memref<64x128xf32, #tpu.memory_space<vmem>>, vector<1x128xf32>
      %68 = tpu.concatenate %25, %31, %37, %43, %49, %55, %61, %67 in 0 : vector<1x128xf32>, vector<1x128xf32>, vector<1x128xf32>, vector<1x128xf32>, vector<1x128xf32>, vector<1x128xf32>, vector<1x128xf32>, vector<1x128xf32> -> vector<8x128xf32>
      %69 = arith.index_cast %19 : i32 to index
      %c0_19 = arith.constant 0 : index
      %70 = vector.load %arg3[%69, %c0_19] : memref<16x128xf32, #tpu.memory_space<vmem>>, vector<8x128xf32>
      tpu.vector_store %arg3[%69, %c0_19], %68 {strides = array<i32>} : memref<16x128xf32, #tpu.memory_space<vmem>>, vector<8x128xf32>,
    }
    %c2_i32_0 = arith.constant 2 : i32
    %c0 = arith.constant 0 : index
    %c0_1 = arith.constant 0 : index
    %2 = vector.load %arg3[%c0, %c0_1] : memref<16x128xf32, #tpu.memory_space<vmem>>, vector<16x128xf32>
    %3 = arith.mulf %2, %2 : vector<16x128xf32>
    %cst = arith.constant dense<0.000000e+00> : vector<16xf32>
    %4 = vector.multi_reduction <add>, %3, %cst [1] : vector<16x128xf32> to vector<16xf32>
    %5 = vector.shape_cast %4 : vector<16xf32> to vector<16x1xf32>
    %6 = math.sqrt %5 : vector<16x1xf32>
    %cst_2 = arith.constant 1.000000e+00 : f32
    %7 = vector.broadcast %cst_2 : f32 to vector<16x1xf32>
    %8 = arith.cmpf ogt, %5, %7 : vector<16x1xf32>
    %cst_3 = arith.constant 1.000000e-07 : f32
    %9 = vector.broadcast %cst_3 : f32 to vector<16x1xf32>
    %10 = arith.addf %6, %9 : vector<16x1xf32>
    %cst_4 = arith.constant 1.000000e+00 : f32
    %11 = vector.broadcast %cst_4 : f32 to vector<16x1xf32>
    %12 = arith.divf %11, %10 : vector<16x1xf32>
    %cst_5 = arith.constant 1.000000e+00 : f32
    %13 = vector.broadcast %cst_5 : f32 to vector<16x1xf32>
    %14 = arith.select %8, %12, %13 : vector<16x1xi1>, vector<16x1xf32>
    %15 = vector.broadcast %14 : vector<16x1xf32> to vector<16x128xf32>
    %16 = arith.mulf %2, %15 : vector<16x128xf32>
    %c0_6 = arith.constant 0 : index
    %c0_7 = arith.constant 0 : index
    %17 = vector.load %arg3[%c0_6, %c0_7] : memref<16x128xf32, #tpu.memory_space<vmem>>, vector<16x128xf32>
    tpu.vector_store %arg3[%c0_6, %c0_7], %16 {strides = array<i32>} : memref<16x128xf32, #tpu.memory_space<vmem>>, vector<16x128xf32>,
    return
  }
  func.func @transform_0(%arg0: i32, %arg1: memref<16xi32, #tpu.memory_space<smem>>) -> (i32, i32) {
    %c0_i32 = arith.constant 0 : i32
    %c0_i32_0 = arith.constant 0 : i32
    %c0_i32_1 = arith.constant 0 : i32
    return %c0_i32, %c0_i32_0 : i32, i32
  }
  func.func @transform_1(%arg0: i32, %arg1: memref<16xi32, #tpu.memory_space<smem>>) -> (i32, i32) {
    %c0_i32 = arith.constant 0 : i32
    %c0_i32_0 = arith.constant 0 : i32
    return %arg0, %c0_i32 : i32, i32
  }
}

</mosaic_0001>

<bundles_post_ra>
// kernel: tpu_custom_call.1
= control target key start
LH: loop header
LB: loop body
LE: loop exit
PB: predicated region body
PF: predicated region fallthrough
CT: control target
= control target key end

     0   :  { %s346_s0 = inlined_call_operand.hbm [shape: s32[16], index: 0, kind: input, shape index: {}]   ;;  %s347_s1 = inlined_call_operand.hbm [shape: f32[64,128], index: 1, kind: input, shape index: {}]   ;;  %s348_s2 = inlined_call_operand.hbm [shape: f32[16,128], index: 2, kind: output, shape index: {}]  }
   0x1   :  { %s195_s11 = scalar_lea.hbm %s346_s0, 16 }
   0x2   :  { %p196_p0 = scmp.ne.s32.totalorder %s346_s0, %s195_s11  ;;  %p199_p1 = scmp.lt.u32.totalorder %s195_s11, %s346_s0 }
   0x4   :  { %p201_p2 = pnand %p199_p1, %p196_p0 }
   0x6   :  { %204 = shalt.err (!%p201_p2)  }
   0x7   :  { %s263_s16 = smov [#allocation3]  }
   0x8   :  { %8 = dma.hbm_to_smem %s346_s0, 16, %s263_s16, [#allocation2] }
   0x9   :  { %253 = dma.done.wait [#allocation2], 16 }
   0xa   :  { %254 = vsyncadd [#allocation2], 4294967280 }
   0xb   :  { %10 = sfence }
   0xc   :  { %11 = vsyncpa [#allocation5], 0 }
   0xd   :  { %12 = vsyncpa [#allocation6], 0  ;;  %s264_s19 = smov [#allocation4]   ;;  %s205_s23 = scalar_lea.hbm %s347_s1, 1024 }
   0xe   :  { %s18_s20 = sshll.u32 %s264_s19, 4  ;;  %p206_p3 = scmp.ne.s32.totalorder %s347_s1, %s205_s23  ;;  %s19_s20 = int_to_ptr.vmem [resolvable:$true] %s18_s20 }
   0xf   :  { %p209_p4 = scmp.lt.u32.totalorder %s205_s23, %s347_s1 }
  0x11   :  { %p211_p5 = pnand %p209_p4, %p206_p3 }
  0x13   :  { %214 = shalt.err (!%p211_p5)
}
  0x14   :  { %s215_s0 = scalar_lea.vmem %s19_s20, 1024  ;;  %p220_p7 = scmp.lt.s32.totalorder %s19_s20, %s19_s20 }
  0x15   :  { %p216_p6 = scmp.ne.s32.totalorder %s19_s20, %s215_s0  ;;  %p221_p8 = scmp.lt.s32.totalorder %s215_s0, %s215_s0 }
  0x17   :  { %p222_p9 = por %p221_p8, %p220_p7 }
  0x19   :  { %p223_p10 = pnand %p222_p9, %p216_p6 }
  0x1b   :  { %226 = shalt.err (!%p223_p10)
}
  0x1c   :  { %s265_s28 = smov 128   ;;  %s266_s29 = smov 8  }
  0x1d   :  { %24 = dma.hbm_to_vmem [thread:$0]  %s347_s1, 1024, %s19_s20, [#allocation5], %s265_s28, %s265_s28, %s266_s29  }
  0x1e   :  { %255 = dma.done.wait [#allocation5], 1024  }
  0x1f   :  { %256 = vsyncadd [#allocation5], 4294966272  ;;  %s310_s4 = smov 0  }
  0x20 LB: > { %s316_s5 = sshll.u32 %s261_s4, 3  ;;  %vm89_vm0 = vcmask 1040384   ;;  %vm91_vm1 = vcmask 1041408   ;;  %vm93_vm2 = vcmask 1042432   ;;  %vm95_vm3 = vcmask 1043456   ;;  %s34_s4 = sadd.s32 1, %s261_s4   ;;  %s261_s4 = sphi %s310_s4, %s34_s4  }
  0x21   : > { %s37_s1 = sld [smem:[#allocation3 + %s316_s5]]  ;;  %s40_s6 = sadd.s32 1, %s316_s5  ;;  %vm97_vm4 = vcmask 1044480   ;;  %vm99_vm5 = vcmask 1045504   ;;  %vm101_vm6 = vcmask 1046528  }
  0x22   : > { %s41_s7 = sld [smem:[#allocation3 + %s40_s6]]  ;;  %s44_s8 = sadd.s32 2, %s316_s5 }
  0x23   : > { %s45_s9 = sld [smem:[#allocation3 + %s44_s8]]  ;;  %s48_s10 = sadd.s32 3, %s316_s5 }
  0x24   : > { %s49_s11 = sld [smem:[#allocation3 + %s48_s10]]  ;;  %s52_s12 = sadd.s32 4, %s316_s5 }
  0x25   : > { %s53_s13 = sld [smem:[#allocation3 + %s52_s12]]  ;;  %s56_s14 = sadd.s32 5, %s316_s5 }
  0x26   : > { %s57_s15 = sld [smem:[#allocation3 + %s56_s14]]  ;;  %s60_s16 = sadd.s32 6, %s316_s5 }
  0x27   : > { %s61_s17 = sld [smem:[#allocation3 + %s60_s16]]  ;;  %s64_s18 = sadd.s32 7, %s316_s5 }
  0x28   : > { %s38_s19 = scalar_lea.vmem [#allocation4], %s37_s1  ;;  %s42_s20 = scalar_lea.vmem [#allocation4], %s41_s7 }
  0x29   : > { %v39_v0 = vld [vmem:[%s38_s19] sm:$0x1]  ;;  %s65_s21 = sld [smem:[#allocation3 + %s64_s18]]  ;;  %s46_s22 = scalar_lea.vmem [#allocation4], %s45_s9 }
  0x2a   : > { %v43_v1 = vld [vmem:[%s42_s20] sm:$0x1]  ;;  %s50_s23 = scalar_lea.vmem [#allocation4], %s49_s11  ;;  %s103_s0 = scalar_lea.vmem [#allocation7], %s316_s5 }
  0x2b   : > { %v47_v2 = vld [vmem:[%s46_s22] sm:$0x1]  ;;  %v69_v3 = vrot.slane %v43_v1, 7  ;;  %s54_s24 = scalar_lea.vmem [#allocation4], %s53_s13  ;;  %p31_p11 = scmp.ge.s32.totalorder %s34_s4, 2  }
  0x2c   : > { %v51_v4 = vld [vmem:[%s50_s23] sm:$0x1]  ;;  %v72_v5 = vrot.slane %v47_v2, 6  ;;  %s58_s25 = scalar_lea.vmem [#allocation4], %s57_s15  ;;  %s267_s30 = smov (%p31_p11), [#allocation7]  }
  0x2d   : > { %v55_v6 = vld [vmem:[%s54_s24] sm:$0x1]  ;;  %v75_v7 = vrot.slane %v51_v4, 5  ;;  %v90_v8 = vsel %vm89_vm0, %v39_v0, %v69_v3  ;;  %s62_s26 = scalar_lea.vmem [#allocation4], %s61_s17  ;;  %s146_s3 = sshll.u32 (%p31_p11), %s267_s30, 4  ;;  %s147_s3 = int_to_ptr.vmem [resolvable:$true] %s146_s3 }
  0x2e   : > { %v59_v9 = vld [vmem:[%s58_s25] sm:$0x1]  ;;  %v78_v10 = vrot.slane %v55_v6, 4  ;;  %v92_v11 = vsel %vm91_vm1, %v90_v8, %v72_v5  ;;  %33 = sbr.rel (!%p31_p11) target bundleno = 32 (0x20), region = 44  ;;  %s227_s4 = scalar_lea.vmem (%p31_p11), %s147_s3, 256 }
  0x2f   : > { %v63_v12 = vld [vmem:[%s62_s26] sm:$0x1]  ;;  %v81_v13 = vrot.slane %v59_v9, 3  ;;  %v94_v14 = vsel %vm93_vm2, %v92_v11, %v75_v7  ;;  %s66_s27 = scalar_lea.vmem [#allocation4], %s65_s21  ;;  %p228_p12 = scmp.ne.s32.totalorder (%p31_p11), %s147_s3, %s227_s4 }
  0x30   : > { %v84_v15 = vrot.slane %v63_v12, 2  ;;  %v96_v16 = vsel %vm95_vm3, %v94_v14, %v78_v10  ;;  %v67_v17 = vld [vmem:[%s66_s27] sm:$0x1]  ;;  %p232_p13 = scmp.lt.s32.totalorder (%p31_p11), %s147_s3, %s147_s3  ;;  %p233_p0 = scmp.lt.s32.totalorder (%p31_p11), %s227_s4, %s227_s4 }
  0x31   : > { %v98_v18 = vsel %vm97_vm4, %v96_v16, %v81_v13  ;;  %v87_v19 = vrot.slane %v67_v17, 1 }
  0x32   : > { %v100_v20 = vsel %vm99_vm5, %v98_v18, %v84_v15  ;;  %p234_p1 = por (%p31_p11), %p233_p0, %p232_p13 }
  0x33   : > { %v102_v21 = vsel %vm101_vm6, %v100_v20, %v87_v19 }
  0x34   : > { %104 = vst [vmem:[%s103_s0] sm:$0xff] %v102_v21  ;;  %p235_p2 = pnand (%p31_p11), %p234_p1, %p228_p12 }
  0x3b   :  { %v105_v22 = vld [vmem:[#allocation7] sm:$0xff]  ;;  %v106_v23 = vld [vmem:[#allocation7 + $0x8] sm:$0xff] }
  0x3c   :  { %v107_v24 = vmul.f32 %v105_v22, %v105_v22  ;;  %v108_v25 = vmul.f32 %v106_v23, %v106_v23 }
  0x3e   :  { %109 = vadd.xlane.f32.xlu0 %v107_v24 }
  0x42   :  { %111 = vadd.xlane.f32.xlu0 %v108_v25 }
  0xcb   :  { %v110_v26 = vpop.xlane.xlu0 %109 }
  0xcc   :  { %187 = vrsqrt.f32 %v110_v26  ;;  %vm115_vm7 = vcmp.eq.f32.partialorder %v110_v26, inf  ;;  %v118_v30 = vand.u32 2147483648, %v110_v26  ;;  %vm117_vm8 = vcmp.eq.f32.partialorder %v110_v26, 0.0 }
  0xcd   :  { %vm127_vm11 = vcmp.gt.f32.partialorder %v110_v26, 1.0 }
  0xcf   :  { %v112_v27 = vpop.xlane.xlu0 %111 }
  0xd0   :  { %189 = vrsqrt.f32 %v112_v27  ;;  %vm122_vm9 = vcmp.eq.f32.partialorder %v112_v27, inf  ;;  %v125_v36 = vand.u32 2147483648, %v112_v27  ;;  %vm124_vm10 = vcmp.eq.f32.partialorder %v112_v27, 0.0 }
  0xd1   :  { %vm128_vm12 = vcmp.gt.f32.partialorder %v112_v27, 1.0 }
  0xd6   :  { %v188_v28 = vpop.eup %187 }
  0xd7   :  { %v114_v29 = vmul.f32 %v188_v28, %v110_v26 }
  0xd9   :  { %v116_v31 = vsel %vm115_vm7, %v110_v26, %v114_v29 }
  0xda   :  { %v190_v32 = vpop.eup %189  ;;  %v119_v33 = vsel %vm117_vm8, %v118_v30, %v116_v31 }
  0xdb   :  { %v121_v34 = vmul.f32 %v190_v32, %v112_v27  ;;  %v129_v35 = vadd.f32 1e-07, %v119_v33 }
  0xdd   :  { %v123_v37 = vsel %vm122_vm9, %v112_v27, %v121_v34  ;;  %191 = vrcp.f32 %v129_v35 }
  0xde   :  { %v126_v38 = vsel %vm124_vm10, %v125_v36, %v123_v37 }
  0xdf   :  { %v130_v39 = vadd.f32 1e-07, %v126_v38 }
  0xe1   :  { %193 = vrcp.f32 %v130_v39 }
  0xe7   :  { %v192_v40 = vpop.eup %191 }
  0xe8   :  { %v135_v41 = vsel %vm127_vm11, %v192_v40, 1.0 }
  0xe9   :  { %v137_v42 = vmul.f32 %v135_v41, %v105_v22 }
  0xeb   :  { %v194_v43 = vpop.eup %193  ;;  %139 = vst [vmem:[#allocation7] sm:$0xff] %v137_v42 }
  0xec   :  { %v136_v44 = vsel %vm128_vm12, %v194_v43, 1.0 }
  0xed   :  { %v138_v45 = vmul.f32 %v136_v44, %v106_v23 }
  0xef   :  { %140 = vst [vmem:[#allocation7 + $0x8] sm:$0xff] %v138_v45 }
  0xf0   :  { %238 = shalt.err (!%p235_p2)
}
  0xf1   :  { %s239_s6 = scalar_lea.hbm %s348_s2, 256 }
  0xf2   :  { %p240_p3 = scmp.ne.s32.totalorder %s348_s2, %s239_s6  ;;  %p243_p4 = scmp.lt.u32.totalorder %s239_s6, %s348_s2 }
  0xf4   :  { %p245_p5 = pnand %p243_p4, %p240_p3 }
  0xf6   :  { %248 = shalt.err (!%p245_p5)
}
  0xf7   :  { %152 = dma.vmem_to_hbm [thread:$0]  %s147_s3, 256, %s348_s2, [#allocation6], %s265_s28, %s265_s28, %s266_s29  }
  0xf8   :  { %257 = dma.done.wait [#allocation6], 256  }
  0xf9   :  { %258 = vsyncadd [#allocation6], 4294967040 }
  0xfa   :  { %156 = vsyncpa [#allocation5], 1 }
  0xfb   :  { %157 = vsyncpa [#allocation6], 1 }

</bundles_post_ra>
